<compile_context>
chip_gen: v7x
topology: tpu7x:2x2x1
jax: 0.10.0
libtpu: 0.0.40
codegen_flags: <defaults>
</compile_context>

<pallas_src>
import jax
import jax.numpy as jnp
from jax import lax
from jax.experimental import pallas as pl
from jax.experimental.pallas import tpu as pltpu


def _round_up(x, m):
    return ((x + m - 1) // m) * m


def _vmem_bytes_estimate(tn, d, h_dim, c, g_pad, in_itemsize, compute_itemsize):
    """Rough VMEM footprint (lane/sublane padded), incl. double-buffering and
    the main in-kernel temporaries."""
    lane = lambda v: _round_up(v, 128)
    sub = lambda v: _round_up(v, 8)
    total = 0
    total += sub(tn) * lane(d) * in_itemsize * 2            # x tile (double-buffered)
    total += sub(1) * lane(tn) * 4 * 2                      # batch ids (int32)
    total += sub(d) * lane(h_dim) * compute_itemsize * 2    # W1
    total += sub(1) * lane(h_dim) * 4 * 2                   # b1
    total += sub(h_dim) * lane(c) * 4 * 2                   # W2 (kept f32)
    total += sub(1) * lane(c) * 4 * 2                       # b2
    total += sub(g_pad) * lane(c) * 4 * 2                   # out block
    total += sub(g_pad) * lane(h_dim) * 4                   # pooled scratch
    # In-kernel temporaries (also live in VMEM):
    total += sub(tn) * lane(d) * compute_itemsize           # x cast to compute dtype
    total += sub(tn) * lane(h_dim) * 4                      # h (f32)
    total += sub(g_pad) * lane(tn) * 4                      # one-hot (f32)
    return total


def _graph_cls_kernel(x_ref, batch_ref, w1_ref, b1_ref, w2_ref, b2_ref,
                      out_ref, pooled_ref):
    # x_ref:      [TN, D]        input dtype   node-feature tile (streamed)
    # batch_ref:  [1, TN]        int32         graph id per node (lane-major)
    # w1_ref:     [D, H]         compute dtype (resident)
    # b1_ref:     [1, H]         float32
    # w2_ref:     [H, C]         float32
    # b2_ref:     [1, C]         float32
    # out_ref:    [1, G_pad, C]  float32       per-split partial logits
    # pooled_ref: [G_pad, H]     float32       VMEM accumulator scratch
    split = pl.program_id(0)
    step = pl.program_id(1)

    @pl.when(step == 0)
    def _init():
        pooled_ref[...] = jnp.zeros_like(pooled_ref)

    compute_dtype = w1_ref.dtype
    tn = x_ref.shape[0]
    g_pad = pooled_ref.shape[0]

    # linear1 + ReLU.  Cast x in-kernel (VPU) so HBM only ever sees the native
    # dtype; bf16 x bf16 operands -> single MXU pass with f32 accumulation.
    x = x_ref[...].astype(compute_dtype)
    h = jnp.dot(x, w1_ref[...],
                preferred_element_type=jnp.float32) + b1_ref[...]
    h = jnp.maximum(h, 0.0)                                         # [TN, H] f32

    # global_add_pool: lane-dense one-hot [G_pad, TN] (graphs on sublanes,
    # nodes on lanes).  One-hot and h stay f32 so the segment sum is exact;
    # MXU cost here is dominated by linear1 anyway (M is only G_pad).
    graph_ids = lax.broadcasted_iota(jnp.int32, (g_pad, tn), 0)     # [G_pad, TN]
    onehot = (batch_ref[...] == graph_ids).astype(jnp.float32)      # [G_pad, TN]
    pooled_ref[...] += jnp.dot(onehot, h,
                               preferred_element_type=jnp.float32)  # [G_pad, H]

    @pl.when(step == pl.num_programs(1) - 1)
    def _finalize():
        out = jnp.dot(pooled_ref[...], w2_ref[...],
                      preferred_element_type=jnp.float32)
        # Bias is added only by split 0 so the cross-split sum adds it once.
        bias_scale = (split == 0).astype(jnp.float32)
        out = out + bias_scale * b2_ref[...]
        out_ref[...] = out[None].astype(out_ref.dtype)


def graph_classification_output(inputs, batch, w1, b1, w2, b2, num_graphs,
                                *, tile_nodes=8192, num_node_splits=2,
                                compute_dtype=jnp.bfloat16):
    """inputs: [N, D], batch: [N] int32 graph ids in [0, num_graphs).

    w1: [D, H], b1: [H], w2: [H, C], b2: [C]  (weights pre-transposed [in,out]).
    Returns [num_graphs, C] float32.
    """
    n, d = inputs.shape
    h_dim = w1.shape[1]
    c = w2.shape[1]

    # Graph dim padded to 8 sublanes; node tile is a multiple of 128 lanes.
    g_pad = _round_up(max(num_graphs, 1), 8)
    splits = max(int(num_node_splits), 1)
    nodes_per_split = -(-n // splits)
    tn = min(_round_up(max(tile_nodes, 128), 128),
             _round_up(max(nodes_per_split, 1), 128))

    in_itemsize = jnp.dtype(inputs.dtype).itemsize
    compute_itemsize = jnp.dtype(compute_dtype).itemsize
    max_vmem = 60 * 1024 * 1024   # stay under v7x's 64 MiB physical VMEM
    while tn > 128 and _vmem_bytes_estimate(
            tn, d, h_dim, c, g_pad, in_itemsize, compute_itemsize) > max_vmem:
        tn = max(128, _round_up(tn // 2, 128))

    num_steps = -(-nodes_per_split // tn)
    n_pad = splits * num_steps * tn

    vmem_estimate = _vmem_bytes_estimate(
        tn, d, h_dim, c, g_pad, in_itemsize, compute_itemsize)
    vmem_limit = min(64 * 1024 * 1024, max(32 * 1024 * 1024, 2 * vmem_estimate))

    # No wrapper-side dtype cast of x (would be an extra HBM round-trip).
    x = inputs
    if n_pad != n:
        x = jnp.pad(x, ((0, n_pad - n), (0, 0)))
    # Padded nodes get graph id -1 -> match no graph -> contribute nothing.
    batch_row = jnp.full((1, n_pad), -1, dtype=jnp.int32)
    batch_row = batch_row.at[0, :n].set(batch.astype(jnp.int32))

    w1c = w1.astype(compute_dtype)            # tiny resident; cast is negligible
    w2f = w2.astype(jnp.float32)              # used only in the tiny finalize dot
    b1r = b1.reshape(1, h_dim).astype(jnp.float32)
    b2r = b2.reshape(1, c).astype(jnp.float32)

    grid_spec = pltpu.PrefetchScalarGridSpec(
        num_scalar_prefetch=0,
        grid=(splits, num_steps),
        in_specs=[
            pl.BlockSpec((tn, d), lambda s, i: (s * num_steps + i, 0)),   # x tile
            pl.BlockSpec((1, tn), lambda s, i: (0, s * num_steps + i)),   # batch ids
            pl.BlockSpec((d, h_dim), lambda s, i: (0, 0)),                # W1
            pl.BlockSpec((1, h_dim), lambda s, i: (0, 0)),                # b1
            pl.BlockSpec((h_dim, c), lambda s, i: (0, 0)),                # W2
            pl.BlockSpec((1, c), lambda s, i: (0, 0)),                    # b2
        ],
        out_specs=pl.BlockSpec((1, g_pad, c), lambda s, i: (s, 0, 0)),
        scratch_shapes=[pltpu.VMEM((g_pad, h_dim), jnp.float32)],
    )

    out_partials = pl.pallas_call(
        _graph_cls_kernel,
        out_shape=jax.ShapeDtypeStruct((splits, g_pad, c), jnp.float32),
        grid_spec=grid_spec,
        compiler_params=pltpu.CompilerParams(
            # split axis shards across TensorCores on 2-TC chips (v7x);
            # node axis reduces into the resident scratch / output block.
            dimension_semantics=("parallel", "arbitrary"),
            vmem_limit_bytes=int(vmem_limit),
        ),
    )(x, batch_row, w1c, b1r, w2f, b2r)

    # Tiny combine of per-split partial logits (bias was added once, by split 0).
    return out_partials.sum(axis=0)[:num_graphs]


def reference(inputs, batch, w1, b1, w2, b2, num_graphs):
    h = jnp.maximum(inputs @ w1 + b1, 0.0)
    pooled = jax.ops.segment_sum(h, batch, num_segments=num_graphs)
    return pooled @ w2 + b2


if __name__ == "__main__":
    # Small shapes consistent with the module's forward pass.
    node_embedding_dim = 32
    hidden_dim = 32
    num_classes = 8
    num_graphs = 4

    key = jax.random.PRNGKey(0)
    k_x, k_b, k_w1, k_b1, k_w2, k_b2, k_x2, k_b2k = jax.random.split(key, 8)

    # Deterministic parameter init (synthetic; weights stored as [in, out]).
    w1 = jax.random.normal(k_w1, (node_embedding_dim, hidden_dim), jnp.float32) * 0.1
    b1 = jax.random.normal(k_b1, (hidden_dim,), jnp.float32) * 0.1
    w2 = jax.random.normal(k_w2, (hidden_dim, num_classes), jnp.float32) * 0.1
    b2 = jax.random.normal(k_b2, (num_classes,), jnp.float32) * 0.1

    # Case 1: small N, default split=2, f32 strict check.
    num_nodes = 64
    inputs = jax.random.normal(k_x, (num_nodes, node_embedding_dim), jnp.float32)
    batch = jax.random.randint(k_b, (num_nodes,), 0, num_graphs, jnp.int32)

    out = graph_classification_output(inputs, batch, w1, b1, w2, b2, num_graphs,
                                      compute_dtype=jnp.float32)
    out = jax.block_until_ready(out)
    ref = reference(inputs, batch, w1, b1, w2, b2, num_graphs)
    assert out.shape == (num_graphs, num_classes)
    assert jnp.allclose(out, ref, atol=1e-4, rtol=1e-4), "mismatch (f32, small N)"

    # Case 2: larger N, small node tile -> multi-step accumulation + node
    # padding, two splits (f32 strict check).
    num_nodes2 = 300
    inputs2 = jax.random.normal(k_x2, (num_nodes2, node_embedding_dim), jnp.float32)
    batch2 = jax.random.randint(k_b2k, (num_nodes2,), 0, num_graphs, jnp.int32)

    out2 = graph_classification_output(inputs2, batch2, w1, b1, w2, b2,
                                       num_graphs, tile_nodes=128,
                                       compute_dtype=jnp.float32)
    out2 = jax.block_until_ready(out2)
    ref2 = reference(inputs2, batch2, w1, b1, w2, b2, num_graphs)
    assert out2.shape == (num_graphs, num_classes)
    assert jnp.allclose(out2, ref2, atol=1e-4, rtol=1e-4), "mismatch (f32, tiled, 2 splits)"

    # Case 2b: single-split path (1 TensorCore layout), f32 strict check.
    out2b = graph_classification_output(inputs2, batch2, w1, b1, w2, b2,
                                        num_graphs, tile_nodes=128,
                                        num_node_splits=1,
                                        compute_dtype=jnp.float32)
    out2b = jax.block_until_ready(out2b)
    assert jnp.allclose(out2b, ref2, atol=1e-4, rtol=1e-4), "mismatch (f32, 1 split)"

    # Case 3: default bf16 compute path (in-kernel cast, f32 pooling), loose check.
    out_bf16 = graph_classification_output(inputs2, batch2, w1, b1, w2, b2,
                                           num_graphs, tile_nodes=128)
    out_bf16 = jax.block_until_ready(out_bf16)
    assert out_bf16.shape == (num_graphs, num_classes)
    assert jnp.allclose(out_bf16, ref2, atol=1e-1, rtol=1e-1), "mismatch (bf16)"

    print("KERNEL_OK")
</pallas_src>

<mosaic_0001>
module attributes {stable_mosaic.version = 11 : i64} {
  func.func @_graph_cls_kernel(%arg0: i32, %arg1: i32, %arg2: memref<128x32xf32, #tpu.memory_space<vmem>>, %arg3: memref<1x128xi32, #tpu.memory_space<vmem>>, %arg4: memref<32x32xf32, #tpu.memory_space<vmem>>, %arg5: memref<1x32xf32, #tpu.memory_space<vmem>>, %arg6: memref<32x8xf32, #tpu.memory_space<vmem>>, %arg7: memref<1x8xf32, #tpu.memory_space<vmem>>, %arg8: memref<1x8x8xf32, #tpu.memory_space<vmem>>, %arg9: memref<8x32xf32, #tpu.memory_space<vmem>>) attributes {dimension_semantics = [#tpu.dimension_semantics<parallel>, #tpu.dimension_semantics<arbitrary>], iteration_bounds = array<i64: 2, 1>, scalar_prefetch = 0 : i64, scratch_operands = 1 : i64, tpu.core_type = #tpu.core_type<tc>, window_params = [{transform_indices = @transform_0, window_bounds = array<i64: 128, 32>}, {transform_indices = @transform_1, window_bounds = array<i64: 1, 128>}, {pipeline_mode = #tpu.pipeline_mode<synchronous>, transform_indices = @transform_2, window_bounds = array<i64: 32, 32>}, {pipeline_mode = #tpu.pipeline_mode<synchronous>, transform_indices = @transform_3, window_bounds = array<i64: 1, 32>}, {pipeline_mode = #tpu.pipeline_mode<synchronous>, transform_indices = @transform_4, window_bounds = array<i64: 32, 8>}, {pipeline_mode = #tpu.pipeline_mode<synchronous>, transform_indices = @transform_5, window_bounds = array<i64: 1, 8>}, {transform_indices = @transform_6, window_bounds = array<i64: 1, 8, 8>}]} {
    %c0_i32 = arith.constant 0 : i32
    %0 = arith.cmpi eq, %arg1, %c0_i32 : i32
    %1 = arith.extui %0 : i1 to i32
    %c0_i32_0 = arith.constant 0 : i32
    %2 = arith.cmpi ne, %1, %c0_i32_0 : i32
    scf.if %2 {
      %cst_16 = arith.constant 0.000000e+00 : f32
      %24 = vector.broadcast %cst_16 : f32 to vector<8x32xf32>
      %c0_17 = arith.constant 0 : index
      %c0_18 = arith.constant 0 : index
      %25 = vector.load %arg9[%c0_17, %c0_18] : memref<8x32xf32, #tpu.memory_space<vmem>>, vector<8x32xf32>
      tpu.vector_store %arg9[%c0_17, %c0_18], %24 {strides = array<i32>} : memref<8x32xf32, #tpu.memory_space<vmem>>, vector<8x32xf32>,
    } else {
    }
    %c0 = arith.constant 0 : index
    %c0_1 = arith.constant 0 : index
    %3 = vector.load %arg2[%c0, %c0_1] : memref<128x32xf32, #tpu.memory_space<vmem>>, vector<128x32xf32>
    %c0_2 = arith.constant 0 : index
    %c0_3 = arith.constant 0 : index
    %4 = vector.load %arg4[%c0_2, %c0_3] : memref<32x32xf32, #tpu.memory_space<vmem>>, vector<32x32xf32>
    %cst = arith.constant dense<0.000000e+00> : vector<128x32xf32>
    %5 = tpu.matmul %3, %4, %cst {dimension_numbers = #tpu.dot_dimension_numbers<[1], [0], [0], [1], [0, 0, 1, 1], [], []>} : vector<128x32xf32>, vector<32x32xf32>, vector<128x32xf32> -> vector<128x32xf32>
    %c0_4 = arith.constant 0 : index
    %c0_5 = arith.constant 0 : index
    %6 = vector.load %arg5[%c0_4, %c0_5] : memref<1x32xf32, #tpu.memory_space<vmem>>, vector<1x32xf32>
    %7 = vector.broadcast %6 : vector<1x32xf32> to vector<128x32xf32>
    %8 = arith.addf %5, %7 : vector<128x32xf32>
    %cst_6 = arith.constant 0.000000e+00 : f32
    %9 = vector.broadcast %cst_6 : f32 to vector<128x32xf32>
    %10 = arith.maximumf %8, %9 : vector<128x32xf32>
    %11 = tpu.iota {dimensions = array<i32: 0>} : vector<8x128xi32>
    %c0_7 = arith.constant 0 : index
    %c0_8 = arith.constant 0 : index
    %12 = vector.load %arg3[%c0_7, %c0_8] : memref<1x128xi32, #tpu.memory_space<vmem>>, vector<1x128xi32>
    %13 = vector.broadcast %12 : vector<1x128xi32> to vector<8x128xi32>
    %14 = arith.cmpi eq, %13, %11 : vector<8x128xi32>
    %15 = arith.extui %14 : vector<8x128xi1> to vector<8x128xi32>
    %16 = arith.sitofp %15 : vector<8x128xi32> to vector<8x128xf32>
    %c0_9 = arith.constant 0 : index
    %c0_10 = arith.constant 0 : index
    %17 = vector.load %arg9[%c0_9, %c0_10] : memref<8x32xf32, #tpu.memory_space<vmem>>, vector<8x32xf32>
    %cst_11 = arith.constant dense<0.000000e+00> : vector<8x32xf32>
    %18 = tpu.matmul %16, %10, %cst_11 {dimension_numbers = #tpu.dot_dimension_numbers<[1], [0], [0], [1], [0, 0, 1, 1], [], []>} : vector<8x128xf32>, vector<128x32xf32>, vector<8x32xf32> -> vector<8x32xf32>
    %19 = arith.addf %17, %18 : vector<8x32xf32>
    %c0_12 = arith.constant 0 : index
    %c0_13 = arith.constant 0 : index
    %20 = vector.load %arg9[%c0_12, %c0_13] : memref<8x32xf32, #tpu.memory_space<vmem>>, vector<8x32xf32>
    tpu.vector_store %arg9[%c0_12, %c0_13], %19 {strides = array<i32>} : memref<8x32xf32, #tpu.memory_space<vmem>>, vector<8x32xf32>,
    %c0_i32_14 = arith.constant 0 : i32
    %21 = arith.cmpi eq, %arg1, %c0_i32_14 : i32
    %22 = arith.extui %21 : i1 to i32
    %c0_i32_15 = arith.constant 0 : i32
    %23 = arith.cmpi ne, %22, %c0_i32_15 : i32
    scf.if %23 {
      %c0_16 = arith.constant 0 : index
      %c0_17 = arith.constant 0 : index
      %24 = vector.load %arg9[%c0_16, %c0_17] : memref<8x32xf32, #tpu.memory_space<vmem>>, vector<8x32xf32>
      %c0_18 = arith.constant 0 : index
      %c0_19 = arith.constant 0 : index
      %25 = vector.load %arg6[%c0_18, %c0_19] : memref<32x8xf32, #tpu.memory_space<vmem>>, vector<32x8xf32>
      %cst_20 = arith.constant dense<0.000000e+00> : vector<8x8xf32>
      %26 = tpu.matmul %24, %25, %cst_20 {dimension_numbers = #tpu.dot_dimension_numbers<[1], [0], [0], [1], [0, 0, 1, 1], [], []>} : vector<8x32xf32>, vector<32x8xf32>, vector<8x8xf32> -> vector<8x8xf32>
      %c0_i32_21 = arith.constant 0 : i32
      %27 = arith.cmpi eq, %arg0, %c0_i32_21 : i32
      %28 = arith.extui %27 : i1 to i32
      %29 = arith.sitofp %28 : i32 to f32
      %c0_22 = arith.constant 0 : index
      %c0_23 = arith.constant 0 : index
      %30 = vector.load %arg7[%c0_22, %c0_23] : memref<1x8xf32, #tpu.memory_space<vmem>>, vector<1x8xf32>
      %31 = vector.broadcast %29 : f32 to vector<1x8xf32>
      %32 = arith.mulf %31, %30 : vector<1x8xf32>
      %33 = vector.broadcast %32 : vector<1x8xf32> to vector<8x8xf32>
      %34 = arith.addf %26, %33 : vector<8x8xf32>
      %35 = vector.shape_cast %34 : vector<8x8xf32> to vector<1x8x8xf32>
      %c0_24 = arith.constant 0 : index
      %c0_25 = arith.constant 0 : index
      %c0_26 = arith.constant 0 : index
      %36 = vector.load %arg8[%c0_24, %c0_25, %c0_26] : memref<1x8x8xf32, #tpu.memory_space<vmem>>, vector<1x8x8xf32>
      tpu.vector_store %arg8[%c0_24, %c0_25, %c0_26], %35 {strides = array<i32>} : memref<1x8x8xf32, #tpu.memory_space<vmem>>, vector<1x8x8xf32>,
    } else {
    }
    return
  }
  func.func @transform_0(%arg0: i32, %arg1: i32) -> (i32, i32) {
    %c1_i32 = arith.constant 1 : i32
    %0 = arith.muli %arg0, %c1_i32 : i32
    %1 = arith.addi %0, %arg1 : i32
    %c0_i32 = arith.constant 0 : i32
    %c0_i32_0 = arith.constant 0 : i32
    return %1, %c0_i32 : i32, i32
  }
  func.func @transform_1(%arg0: i32, %arg1: i32) -> (i32, i32) {
    %c1_i32 = arith.constant 1 : i32
    %0 = arith.muli %arg0, %c1_i32 : i32
    %1 = arith.addi %0, %arg1 : i32
    %c0_i32 = arith.constant 0 : i32
    %c0_i32_0 = arith.constant 0 : i32
    return %c0_i32, %1 : i32, i32
  }
  func.func @transform_2(%arg0: i32, %arg1: i32) -> (i32, i32) {
    %c0_i32 = arith.constant 0 : i32
    %c0_i32_0 = arith.constant 0 : i32
    %c0_i32_1 = arith.constant 0 : i32
    return %c0_i32, %c0_i32_0 : i32, i32
  }
  func.func @transform_3(%arg0: i32, %arg1: i32) -> (i32, i32) {
    %c0_i32 = arith.constant 0 : i32
    %c0_i32_0 = arith.constant 0 : i32
    %c0_i32_1 = arith.constant 0 : i32
    return %c0_i32, %c0_i32_0 : i32, i32
  }
  func.func @transform_4(%arg0: i32, %arg1: i32) -> (i32, i32) {
    %c0_i32 = arith.constant 0 : i32
    %c0_i32_0 = arith.constant 0 : i32
    %c0_i32_1 = arith.constant 0 : i32
    return %c0_i32, %c0_i32_0 : i32, i32
  }
  func.func @transform_5(%arg0: i32, %arg1: i32) -> (i32, i32) {
    %c0_i32 = arith.constant 0 : i32
    %c0_i32_0 = arith.constant 0 : i32
    %c0_i32_1 = arith.constant 0 : i32
    return %c0_i32, %c0_i32_0 : i32, i32
  }
  func.func @transform_6(%arg0: i32, %arg1: i32) -> (i32, i32, i32) {
    %c0_i32 = arith.constant 0 : i32
    %c0_i32_0 = arith.constant 0 : i32
    %c0_i32_1 = arith.constant 0 : i32
    return %arg0, %c0_i32, %c0_i32_0 : i32, i32, i32
  }
}

</mosaic_0001>

<bundles_post_ra>
// kernel: tpu_custom_call.1
= control target key start
LH: loop header
LB: loop body
LE: loop exit
PB: predicated region body
PF: predicated region fallthrough
CT: control target
= control target key end

     0   :  { %11 = vsyncpa [#allocation4], 0  ;;  %s1385_s0 = inlined_call_operand.vmem [shape: f32[256,32], index: 0, kind: input, shape index: {}]   ;;  %s1386_s1 = inlined_call_operand.vmem [shape: s32[1,256], index: 1, kind: input, shape index: {}]   ;;  %s1387_s2 = inlined_call_operand.vmem [shape: f32[32,32], index: 2, kind: input, shape index: {}]   ;;  %s1388_s3 = inlined_call_operand.vmem [shape: f32[1,32], index: 3, kind: input, shape index: {}]   ;;  %s1389_s4 = inlined_call_operand.vmem [shape: f32[32,8], index: 4, kind: input, shape index: {}]   ;;  %s1390_s5 = inlined_call_operand.vmem [shape: f32[1,8], index: 5, kind: input, shape index: {}]   ;;  %s1391_s6 = inlined_call_operand.hbm [shape: f32[2,8,8], index: 6, kind: output, shape index: {}]  }
   0x1   :  { %13 = vsyncpa [#allocation4 + $0x1], 0  ;;  %s1173_s21 = smov 0   ;;  %s1175_s22 = smov 0  }
   0x2   :  { %s1177_s23 = smov 0   ;;  %s1179_s24 = smov 0  }
   0x3   :  { %s1181_s25 = smov 0   ;;  %s1183_s26 = smov 0  }
   0x4 LB: > { %s803_s27 = sadd.s32 4294967295, %s1131_s26   ;;  %s804_s28 = sadd.s32 4294967294, %s1131_s26   ;;  %s1131_s26 = sphi %s1183_s26, %s19_s26   ;;  %s1127_s25 = sphi %s1181_s25, %s1398_s25   ;;  %s1123_s24 = sphi %s1179_s24, %s1397_s24   ;;  %s1119_s23 = sphi %s1177_s23, %s1396_s23   ;;  %s1115_s22 = sphi %s1175_s22, %s1395_s22   ;;  %s1111_s21 = sphi %s1173_s21, %s1394_s21  }
   0x5   : > { %s31_s29 = sadd.s32 1, %s1127_s25  ;;  %s178_s30 = sadd.s32 1, %s1119_s23 }
   0x6   : > { %p33_p0 = scmp.ge.s32.totalorder %s31_s29, 2  ;;  %p188_p1 = scmp.ne.s32.totalorder %s1119_s23, %s1115_s22 }
   0x7   : > { %p189_p2 = scmp.eq.s32.totalorder %s803_s27, 1  ;;  %p194_p3 = scmp.ne.s32.totalorder %s1115_s22, %s1111_s21 }
   0x8   : > { %s1400_s29 = smov (%p33_p0, %s31_s29), 0  ;;  %p195_p5 = scmp.eq.s32.totalorder %s804_s28, 1 }
   0x9   : > { %p1213_p4 = por %p189_p2, %p188_p1  ;;  %s175_s8 = ssub.s32 %s1127_s25, %s1400_s29 }
   0xa   : > { %p807_p6 = scmp.ge.s32.totalorder %s1131_s26, 1  ;;  %p176_p7 = scmp.eq.s32.totalorder %s175_s8, 0 }
   0xb   : > { %p1220_p8 = por %p195_p5, %p194_p3  ;;  %p244_p9 = scmp.lt.s32.totalorder %s1131_s26, 3 }
   0xc   : > { %s1226_s10 = scalar_select %p176_p7, %s1119_s23, %s178_s30  }
   0xd   : > { %p245_p10 = pnand %p807_p6, %p244_p9 }
   0xe   : > { %v314_v0 = vld [vmem:[%s1387_s2] sm:$0xff] (!%p245_p10)  ;;  %v315_v1 = vld [vmem:[%s1387_s2 + $0x8] sm:$0xff] (!%p245_p10)  ;;  %v316_v2 = vld [vmem:[%s1387_s2 + $0x10] sm:$0xff] (!%p245_p10)  ;;  %s809_s17 = sshll.u32 (!%p245_p10), %s1123_s24, 4  ;;  %vm296_vm0 = vcmask (!%p245_p10), 261120   ;;  %v1133_v22 = vmov (!%p245_p10), 0.0|0.0  }
   0xf   : > { %248 = sbr.rel (%p245_p10) target bundleno = 727 (0x2d7), region = 44  ;;  %v956_v3 = vpack.c.bf16 (!%p245_p10), %v315_v1, %v314_v0  ;;  %v317_v4 = vld [vmem:[%s1387_s2 + $0x18] sm:$0xff] (!%p245_p10)  ;;  %p281_p11 = scmp.lt.s32.totalorder (!%p245_p10), %s809_s17, 31  ;;  %964 = vmatprep.subr.bf16.mxu1 (!%p245_p10), %v1133_v22  ;;  %v1134_v23 = vmov (!%p245_p10), 0.0   ;;  %vm1135_vm1 = vmmov (!%p245_p10), 0   ;;  %v622_v24 = vld [vmem:[%s1389_s4] sm:$0xff] (!%p245_p10) }
  0x10   : > { %v960_v5 = vpack.c.bf16 (!%p245_p10), %v317_v4, %v316_v2  ;;  %297 = vst.msk [vmem:[#allocation2] sm:$0xff] (!%p245_p10), %vm296_vm0, %v1134_v23  ;;  %942 = vmatprep.mubr.msk.f32.mxu1 (!%p245_p10), %vm1135_vm1, %v1134_v23  ;;  %v623_v25 = vld [vmem:[%s1389_s4 + $0x8] sm:$0xff] (!%p245_p10)  ;;  %v624_v26 = vld [vmem:[%s1389_s4 + $0x10] sm:$0xff] (!%p245_p10)  ;;  %v625_v28 = vld [vmem:[%s1389_s4 + $0x18] sm:$0xff] (!%p245_p10)  ;;  %p288_p12 = scmp.lt.s32.totalorder (!%p245_p10), %s1123_s24, 1  ;;  %p626_p13 = scmp.eq.s32.totalorder (!%p245_p10), %s1123_s24, 0 }
  0x11   : > { %957 = vmatprep.subr.bf16.mxu0 (!%p245_p10), %v956_v3  ;;  %v989_v27 = vpack.c.bf16 (!%p245_p10), %v623_v25, %v622_v24  ;;  %v992_v29 = vpack.c.bf16 (!%p245_p10), %v625_v28, %v624_v26  ;;  %v1297_v30 = vld [vmem:[%s1388_s3] ss:$0 sm:$0xff] (!%p245_p10)  ;;  %s276_s12 = sand.u32 (!%p245_p10), 1, %s1115_s22   ;;  %s833_s16 = sshll.u32 (!%p245_p10), %s1123_s24, 7  ;;  %vm711_vm3 = vcmask (!%p245_p10), 64512  }
  0x12   : > { %959 = vmatpush3.bf16.msra.mxu0 (!%p245_p10), %v956_v3  ;;  %s808_s15 = sshll.u32 (!%p245_p10), %s276_s12, 3  ;;  %s1338_s27 = scalar_lea.hbm (!%p245_p10), %s1391_s6, %s833_s16 }
  0x13   : > { %961 = vmatprep.subr.bf16.mxu0 (!%p245_p10), %v960_v5  ;;  %s714_s28 = scalar_lea.sflag (!%p245_p10), [#allocation4], %s276_s12 }
  0x16   : > { %s1402_s17 = smov (!%p281_p11, %s809_s17), 31  ;;  %963 = vmatpush3.bf16.msra.mxu0 %v960_v5 }
  0x17   : > { %s810_s20 = sshll.u32 %s1402_s17, 3  ;;  %988 = vmatprep.subr.bf16.mxu0 %v1133_v22  ;;  %v545_v28 = vld [vmem:[#allocation2] sm:$0xff]  ;;  %s278_s17 = scalar_lea.vmem [#allocation3], %s808_s15 }
  0x18   : > { %s1244_s30 = scalar_lea.vmem %s1385_s0, %s810_s20  ;;  %s727_s18 = sshll.u32 %s278_s17, 4  ;;  %s1340_s18 = int_to_ptr.vmem [resolvable:$true] %s727_s18 }
  0x19   : > { %v298_v6 = vld [vmem:[%s1244_s30] sm:$0xff]  ;;  %v299_v7 = vld [vmem:[%s1244_s30 + $0x8] sm:$0xff]  ;;  %v300_v8 = vld [vmem:[%s1244_s30 + $0x10] sm:$0xff]  ;;  %s289_s20 = scalar_select %p288_p12, %s1123_s24, 1 }
  0x1a   : > { %886 = vmatprep.mubr.msk.f32.mxu0 %vm296_vm0, %v298_v6  ;;  %v301_v9 = vld [vmem:[%s1244_s30 + $0x18] sm:$0xff]  ;;  %v302_v10 = vld [vmem:[%s1244_s30 + $0x20] sm:$0xff]  ;;  %v303_v11 = vld [vmem:[%s1244_s30 + $0x28] sm:$0xff]  ;;  %s627_s8 = scalar_select %p626_p13, 1, 0 }
  0x1b   : > { %887 = vmatmul.mubr.msk.f32.vlgmr.msra.gmra.mrb[0].mxu0 %vm296_vm0, %v299_v7  ;;  %v304_v12 = vld [vmem:[%s1244_s30 + $0x30] sm:$0xff]  ;;  %v305_v13 = vld [vmem:[%s1244_s30 + $0x38] sm:$0xff]  ;;  %v306_v14 = vld [vmem:[%s1244_s30 + $0x40] sm:$0xff]  ;;  %s1137_s24 = smov [#allocation3]  }
  0x1c   : > { %889 = vmatprep.mubr.msk.f32.mxu0 %vm296_vm0, %v300_v8  ;;  %v307_v15 = vld [vmem:[%s1244_s30 + $0x48] sm:$0xff]  ;;  %v308_v16 = vld [vmem:[%s1244_s30 + $0x50] sm:$0xff]  ;;  %v309_v17 = vld [vmem:[%s1244_s30 + $0x58] sm:$0xff]  ;;  %990 = vmatpush3.bf16.msra.mxu0 %v989_v27  ;;  %v1136_v27 = vmov 1.0   ;;  %s628_s11 = scvt.s32.f32 %s627_s8  ;;  %s1057_s8 = sshll.u32 %s1137_s24, 4  ;;  %s1058_s8 = int_to_ptr.vmem [resolvable:$false] %s1057_s8 }
  0x1d   : > { %v310_v18 = vld [vmem:[%s1244_s30 + $0x60] sm:$0xff]  ;;  %v311_v19 = vld [vmem:[%s1244_s30 + $0x68] sm:$0xff]  ;;  %v312_v20 = vld [vmem:[%s1244_s30 + $0x70] sm:$0xff]  ;;  %991 = vmatprep.subr.bf16.mxu0 %v1133_v22  ;;  %p1060_p3 = scmp.lt.s32.totalorder %s1340_s18, %s1058_s8 }
  0x1e   : > { %v313_v21 = vld [vmem:[%s1244_s30 + $0x78] sm:$0xff]  ;;  %s290_s30 = scalar_lea.vmem %s1386_s1, %s289_s20 }
  0x1f   : > { %890 = vmatmul.mubr.msk.f32.gmra.mrb[2].mxu0 %vm296_vm0, %v301_v9  ;;  %v828_v25 = vld [vmem:[%s290_s30] ss:$0 sm:$0xff]  ;;  %s1053_s30 = scalar_lea.vmem %s1340_s18, 128 }
  0x20   : > { %892 = vmatprep.mubr.msk.f32.mxu0 %vm296_vm0, %v302_v10  ;;  %993 = vmatpush3.bf16.msra.mxu0 %v992_v29  ;;  %p1054_p0 = scmp.ne.s32.totalorder %s1340_s18, %s1053_s30 }
  0x22   : > { %p1055_p1 = pnand %p1054_p0, %p1213_p4 }
  0x23   : > { %893 = vmatmul.mubr.msk.f32.gmra.mrb[4].mxu0 %vm296_vm0, %v303_v11 }
  0x24   : > { %895 = vmatprep.mubr.msk.f32.mxu0 %vm296_vm0, %v304_v12  ;;  %p1056_p2 = pneg %p1055_p1 }
  0x27   : > { %896 = vmatmul.mubr.msk.f32.gmra.mrb[6].mxu0 %vm296_vm0, %v305_v13 }
  0x28   : > { %898 = vmatprep.mubr.msk.f32.mxu0 %vm296_vm0, %v306_v14 }
  0x2b   : > { %899 = vmatmul.mubr.msk.f32.gmra.mrb[8].mxu0 %vm296_vm0, %v307_v15 }
  0x2c   : > { %901 = vmatprep.mubr.msk.f32.mxu0 %vm296_vm0, %v308_v16  ;;  %v535_v16 = vlaneseq }
  0x2e   : > { %v536_v24 = vshrl.u32 %v535_v16, 7 }
  0x2f   : > { %902 = vmatmul.mubr.msk.f32.gmra.mrb[10].mxu0 %vm296_vm0, %v309_v17 }
  0x30   : > { %904 = vmatprep.mubr.msk.f32.mxu0 %vm296_vm0, %v310_v18  ;;  %vm542_vm2 = vcmp.eq.s32.totalorder %v828_v25, %v536_v24 }
  0x33   : > { %905 = vmatmul.mubr.msk.f32.gmra.mrb[12].mxu0 %vm296_vm0, %v311_v19 }
  0x34   : > { %907 = vmatprep.mubr.msk.f32.mxu0 %vm296_vm0, %v312_v20 }
  0x37   : > { %908 = vmatmul.mubr.msk.f32.gmra.mrb[14].mxu0 %vm296_vm0, %v313_v21 }
  0x38   : > { %953 = vmatprep.mubr.msk.f32.mxu0 %vm1135_vm1, %v1134_v23 }
  0xee   : > { %v888_v31 = vpop.f32.mrb[0].mxu0 }
  0xef   : > { %v446_v32 = vadd.f32 %v888_v31, %v1297_v30  ;;  %v440_v33 = vpop.f32.mrb[1].mxu0 }
  0xf0   : > { %v441_v34 = vadd.f32 %v1297_v30, %v440_v33  ;;  %v630_v33 = vstv %s628_s11  ;;  %s1059_s11 = scalar_lea.vmem %s1058_s8, 256 }
  0xf1   : > { %v520_v35 = vmax.f32 %v446_v32, 0.0  ;;  %p1061_p5 = scmp.lt.s32.totalorder %s1059_s11, %s1053_s30 }
  0xf2   : > { %v519_v36 = vmax.f32 %v441_v34, 0.0  ;;  %v891_v37 = vpop.f32.mrb[2].mxu0 }
  0xf3   : > { %v456_v38 = vadd.f32 %v891_v37, %v1297_v30  ;;  %v450_v39 = vpop.f32.mrb[3].mxu0  ;;  %p1062_p6 = por %p1061_p5, %p1060_p3 }
  0xf4   : > { %v451_v40 = vadd.f32 %v1297_v30, %v450_v39  ;;  %v965_v41 = vpack.c.bf16 %v520_v35, %v519_v36  ;;  %v635_v35 = vsub.s32 0, %v536_v24 }
  0xf5   : > { %v522_v42 = vmax.f32 %v456_v38, 0.0  ;;  %p1063_p7 = pnand %p1062_p6, %p1056_p2 }
  0xf6   : > { %v521_v43 = vmax.f32 %v451_v40, 0.0  ;;  %v894_v44 = vpop.f32.mrb[4].mxu0  ;;  %966 = vmatpush3.bf16.msra.mxu1 %v965_v41 }
  0xf7   : > { %v466_v45 = vadd.f32 %v894_v44, %v1297_v30  ;;  %v460_v46 = vpop.f32.mrb[5].mxu0  ;;  %967 = vmatprep.subr.bf16.mxu1 %v1133_v22 }
  0xf8   : > { %v968_v47 = vpack.c.bf16 %v522_v42, %v521_v43  ;;  %v461_v48 = vadd.f32 %v1297_v30, %v460_v46 }
  0xf9   : > { %v524_v49 = vmax.f32 %v466_v45, 0.0 }
  0xfa   : > { %v523_v50 = vmax.f32 %v461_v48, 0.0  ;;  %v897_v51 = vpop.f32.mrb[6].mxu0  ;;  %969 = vmatpush3.bf16.msra.mxu1 %v968_v47 }
  0xfb   : > { %v476_v52 = vadd.f32 %v897_v51, %v1297_v30  ;;  %v470_v53 = vpop.f32.mrb[7].mxu0  ;;  %970 = vmatprep.subr.bf16.mxu1 %v1133_v22 }
  0xfc   : > { %v971_v54 = vpack.c.bf16 %v524_v49, %v523_v50  ;;  %v471_v55 = vadd.f32 %v1297_v30, %v470_v53 }
  0xfd   : > { %v526_v56 = vmax.f32 %v476_v52, 0.0 }
  0xfe   : > { %v525_v57 = vmax.f32 %v471_v55, 0.0  ;;  %v900_v58 = vpop.f32.mrb[8].mxu0  ;;  %972 = vmatpush3.bf16.msra.mxu1 %v971_v54 }
  0xff   : > { %v486_v59 = vadd.f32 %v900_v58, %v1297_v30  ;;  %v480_v60 = vpop.f32.mrb[9].mxu0  ;;  %973 = vmatprep.subr.bf16.mxu1 %v1133_v22 }
 0x100   : > { %v974_v61 = vpack.c.bf16 %v526_v56, %v525_v57  ;;  %v481_v62 = vadd.f32 %v1297_v30, %v480_v60 }
 0x101   : > { %v528_v63 = vmax.f32 %v486_v59, 0.0 }
 0x102   : > { %v527_v0 = vmax.f32 %v481_v62, 0.0  ;;  %v903_v1 = vpop.f32.mrb[10].mxu0  ;;  %975 = vmatpush3.bf16.msra.mxu1 %v974_v61 }
 0x103   : > { %v496_v2 = vadd.f32 %v903_v1, %v1297_v30  ;;  %v490_v3 = vpop.f32.mrb[11].mxu0  ;;  %976 = vmatprep.subr.bf16.mxu1 %v1133_v22 }
 0x104   : > { %v977_v4 = vpack.c.bf16 %v528_v63, %v527_v0  ;;  %v491_v5 = vadd.f32 %v1297_v30, %v490_v3 }
 0x105   : > { %v530_v6 = vmax.f32 %v496_v2, 0.0 }
 0x106   : > { %v529_v7 = vmax.f32 %v491_v5, 0.0  ;;  %v906_v8 = vpop.f32.mrb[12].mxu0  ;;  %978 = vmatpush3.bf16.msra.mxu1 %v977_v4 }
 0x107   : > { %v506_v9 = vadd.f32 %v906_v8, %v1297_v30  ;;  %v500_v10 = vpop.f32.mrb[13].mxu0  ;;  %979 = vmatprep.subr.bf16.mxu1 %v1133_v22 }
 0x108   : > { %v980_v11 = vpack.c.bf16 %v530_v6, %v529_v7  ;;  %v501_v12 = vadd.f32 %v1297_v30, %v500_v10 }
 0x109   : > { %v532_v13 = vmax.f32 %v506_v9, 0.0 }
 0x10a   : > { %v531_v14 = vmax.f32 %v501_v12, 0.0  ;;  %v909_v15 = vpop.f32.mrb[14].mxu0  ;;  %981 = vmatpush3.bf16.msra.mxu1 %v980_v11 }
 0x10b   : > { %v516_v17 = vadd.f32 %v909_v15, %v1297_v30  ;;  %v510_v18 = vpop.f32.mrb[15].mxu0  ;;  %982 = vmatprep.subr.bf16.mxu1 %v1133_v22 }
 0x10c   : > { %v983_v19 = vpack.c.bf16 %v532_v13, %v531_v14  ;;  %v511_v20 = vadd.f32 %v1297_v30, %v510_v18 }
 0x10d   : > { %v534_v21 = vmax.f32 %v516_v17, 0.0 }
 0x10e   : > { %v533_v23 = vmax.f32 %v511_v20, 0.0  ;;  %984 = vmatpush3.bf16.msra.mxu1 %v983_v19 }
 0x10f   : > { %985 = vmatprep.subr.bf16.mxu1 %v1133_v22  ;;  %v629_v22 = vld [vmem:[%s1390_s5] sm:$0x1] }
 0x110   : > { %v986_v26 = vpack.c.bf16 %v534_v21, %v533_v23  ;;  %v631_v34 = vmul.f32 %v630_v33, %v629_v22 }
 0x112   : > { %987 = vmatpush3.bf16.msra.mxu1 %v986_v26  ;;  %v636_v36 = vrot.slane %v631_v34, %v635_v35 }
 0x115   : > { %943 = vmatmul.mubr.msk.f32.vlgmr.msra.gmra.mrb[0].mxu1 %vm542_vm2, %v1136_v27 }
 0x1e8   : > { %v612_v29 = vpop.f32.mrb[0].mxu1 }
 0x1e9   : > { %v616_v30 = vadd.f32 %v612_v29, %v545_v28  ;;  %v944_v31 = vpop.f32.mrb[1].mxu1 }
 0x1eb   : > { %617 = vst.msk [vmem:[#allocation2] sm:$0xff] %vm296_vm0, %v616_v30 }
 0x1f2   : > { %v621_v32 = vld [vmem:[#allocation2] sm:$0xff] }
 0x1f3   : > { %954 = vmatmul.mubr.msk.f32.vlgmr.msra.gmra.mrb[16].mxu0 %vm296_vm0, %v621_v32 }
 0x2c6   : > { %v707_v37 = vpop.f32.mrb[16].mxu0 }
 0x2c7   : > { %v708_v38 = vadd.f32 %v707_v37, %v636_v36  ;;  %v955_v39 = vpop.f32.mrb[17].mxu0 }
 0x2c9   : > { %712 = vst.msk [vmem:[%s278_s17] sm:$0xff] %vm711_vm3, %v708_v38 }
 0x2ca   : > { %1066 = shalt.err (!%p1063_p7)
}
 0x2cb   : > { %s1067_s12 = scalar_lea.hbm %s1338_s27, 128  ;;  %s1071_s15 = scalar_lea.hbm %s1391_s6, 256 }
 0x2cc   : > { %p1068_p9 = scmp.ne.s32.totalorder %s1338_s27, %s1067_s12  ;;  %p1072_p12 = scmp.lt.u32.totalorder %s1338_s27, %s1391_s6 }
 0x2cd   : > { %p1073_p13 = scmp.lt.u32.totalorder %s1071_s15, %s1067_s12  ;;  %p1075_p1 = scmp.lt.u32.totalorder %s1067_s12, %s1338_s27 }
 0x2ce   : > { %p1069_p10 = pnand %p1068_p9, %p1213_p4 }
 0x2cf   : > { %p1074_p0 = por %p1073_p13, %p1072_p12 }
 0x2d0   : > { %p1070_p11 = pneg %p1069_p10 }
 0x2d1   : > { %p1076_p2 = por %p1075_p1, %p1074_p0 }
 0x2d3   : > { %p1077_p3 = pnand %p1076_p2, %p1070_p11 }
 0x2d5   : > { %1080 = shalt.err (!%p1077_p3)
}
 0x2d6   : > { %994 = dma.vmem_to_hbm [thread:$0]  (%p1213_p4), %s1340_s18, 128, %s1338_s27, %s714_s28  }
 0x2d7 PF: > { %p1000_p5 = scmp.ge.s32.totalorder %s1131_s26, 2  ;;  %s739_s19 = sand.u32 1, %s1111_s21  }
 0x2d8   : > { %s740_s20 = scalar_lea.sflag [#allocation4], %s739_s19 }
 0x2d9   : > { %p997_p6 = pnand %p1000_p5, %p1220_p8 }
 0x2db   : > { %1106 = dma.done.wait (!%p997_p6), %s740_s20, 128  }
 0x2dc   : > { %1108 = vsyncadd (!%p997_p6), %s740_s20, 4294967168  ;;  %s19_s26 = sadd.s32 1, %s1131_s26   ;;  %s1394_s21 = smov %s1115_s22 }
 0x2dd   : > { %p16_p7 = scmp.ge.s32.totalorder %s19_s26, 4   ;;  %s1395_s22 = smov %s1119_s23 }
 0x2de   : > { %s1396_s23 = smov %s1226_s10  ;;  %s1397_s24 = smov %s1127_s25 }
 0x2df   : > { %s1398_s25 = smov %s1400_s29  ;;  %18 = sbr.rel (!%p16_p7) target bundleno = 4 (0x4), region = 90 }
 0x2e6   :  { %745 = vsyncpa [#allocation4], 1 }
 0x2e7   :  { %747 = vsyncpa [#allocation4 + $0x1], 1 }

</bundles_post_ra>
